<compile_context>
chip_gen: v6e
topology: v6e:2x2x1
jax: 0.10.0
libtpu: 0.0.40
codegen_flags: <defaults>
</compile_context>

<pallas_src>
import functools
import math

import numpy as np
import jax
import jax.numpy as jnp
from jax.experimental import pallas as pl
from jax.experimental.pallas import tpu as pltpu

_SUBLANES = 8
_LANES = 128


# ----------------------------- Pallas kernel ------------------------------ #

def _fused_weighted_sum_kernel(dims, f_ref, p_ref, o_ref):
    # f_ref: (D,) factors in SMEM; p_ref: (D, 8, C) packed params in VMEM;
    # o_ref: (8, C) output in VMEM.  `dims` is a small static constant, so the
    # Python loop unrolls into D scalar-broadcast FMAs on the VPU.
    acc = f_ref[0] * p_ref[0]
    for d in range(1, dims):
        acc = acc + f_ref[d] * p_ref[d]
    o_ref[...] = acc


def fused_weighted_sum(factors, fused):
    """factors: (D,) f32, fused: (D, 8, C) f32 -> (8, C) f32 weighted sum."""
    D, R, C = fused.shape
    return pl.pallas_call(
        functools.partial(_fused_weighted_sum_kernel, D),
        out_shape=jax.ShapeDtypeStruct((R, C), jnp.float32),
        in_specs=[
            pl.BlockSpec(memory_space=pltpu.MemorySpace.SMEM),   # factors
            pl.BlockSpec(memory_space=pltpu.MemorySpace.VMEM),   # packed params
        ],
        out_specs=pl.BlockSpec(memory_space=pltpu.MemorySpace.VMEM),
    )(factors, fused)


# ----------------------- deterministic parameter init --------------------- #

def _kaiming_uniform_conv(key, out_c, in_c, k):
    # PyTorch kaiming_uniform_(a=sqrt(5)) on conv weight -> bound = 1/sqrt(fan_in)
    fan_in = in_c * k * k
    bound = 1.0 / math.sqrt(fan_in)
    kw, kb = jax.random.split(key)
    w = jax.random.uniform(kw, (out_c, in_c, k, k), jnp.float32, -bound, bound)
    b = jax.random.uniform(kb, (out_c,), jnp.float32, -bound, bound)
    return w, b


def _kaiming_uniform_linear(key, out_f, in_f):
    fan_in = in_f
    bound = 1.0 / math.sqrt(fan_in)
    kw, kb = jax.random.split(key)
    w = jax.random.uniform(kw, (out_f, in_f), jnp.float32, -bound, bound)
    b = jax.random.uniform(kb, (out_f,), jnp.float32, -bound, bound)
    return w, b


def make_params(key, n_channels, n_units, dimensions, n_classes):
    """Returns dict of stacked (D, ...) parameter groups, mirroring __init__."""
    groups = {}
    specs = [
        ("conv0", "conv", n_channels, n_units, 9),
        ("conv1", "conv", n_units, n_units, 3),
        ("convF", "conv", n_units, n_units, 13),
        ("fc", "linear", n_units, n_classes, None),
    ]
    for name, kind, in_d, out_d, k in specs:
        ws, bs = [], []
        for _ in range(dimensions):
            key, sub = jax.random.split(key)
            if kind == "conv":
                w, b = _kaiming_uniform_conv(sub, out_d, in_d, k)
            else:
                w, b = _kaiming_uniform_linear(sub, out_d, in_d)
            ws.append(w)
            bs.append(b)
        groups[name] = (jnp.stack(ws), jnp.stack(bs))
    return groups


# ------------------------- one-time parameter packing ---------------------- #

def pack_groups(groups, dimensions):
    """Concatenate every flattened (D, n) group into one (D, 8, C) f32 slab.

    Done ONCE at construction time (parameters are static across forwards).
    Returns (fused, layout) where layout = [(key, tag, offset, shape), ...].
    """
    parts = []
    layout = []
    off = 0
    for name, (w_stack, b_stack) in groups.items():
        for tag, stack in (("w", w_stack), ("b", b_stack)):
            shape = tuple(int(s) for s in stack.shape[1:])
            n = int(np.prod(shape))
            parts.append(stack.reshape(dimensions, n).astype(jnp.float32))
            layout.append((f"{tag}_{name}", tag, off, shape))
            off += n
    n_total = off
    flat = jnp.concatenate(parts, axis=1)                      # (D, N_total)
    tile = _SUBLANES * _LANES
    n_pad = ((n_total + tile - 1) // tile) * tile              # multiple of 1024
    flat = jnp.pad(flat, ((0, 0), (0, n_pad - n_total)))
    fused = flat.reshape(dimensions, _SUBLANES, n_pad // _SUBLANES)
    return fused, layout


# ------------------------------- forward ----------------------------------- #

def configuration_forward(fused, layout, hyper_output):
    """Mirrors Configuration.forward: returns (weights, biases) dicts."""
    factors = jnp.asarray(hyper_output, dtype=jnp.float32)
    out2d = fused_weighted_sum(factors, fused)                 # (8, C)
    out_flat = out2d.reshape(-1)                               # row-major: same order as packing
    weights, biases = {}, {}
    for key_name, tag, off, shape in layout:
        n = int(np.prod(shape))
        val = out_flat[off:off + n].reshape(shape)
        if tag == "w":
            weights[key_name] = val
        else:
            biases[key_name] = val
    return weights, biases


def make_forward(fused, layout):
    """Jit-compiled forward with the static packed params / layout baked in."""
    return jax.jit(lambda hyper_output: configuration_forward(fused, layout, hyper_output))


# --------------------------------- main ------------------------------------ #

if __name__ == "__main__":
    n_channels, n_units, dimensions, n_classes = 4, 8, 3, 10

    key = jax.random.PRNGKey(0)
    key, pkey, hkey = jax.random.split(key, 3)
    groups = make_params(pkey, n_channels, n_units, dimensions, n_classes)

    # Pack all parameter groups once (static across forwards).
    fused, layout = pack_groups(groups, dimensions)

    # hyper_output: `dimensions` scalar mixing factors
    hyper_output = jax.random.uniform(hkey, (dimensions,), jnp.float32)

    forward = make_forward(fused, layout)
    weights, biases = forward(hyper_output)
    jax.block_until_ready((weights, biases))

    # Reference check against plain-JAX tensordot of the same weighted sum.
    f = hyper_output
    ok = True
    for name, (w_stack, b_stack) in groups.items():
        ref_w = jnp.tensordot(f, w_stack, axes=([0], [0]))
        ref_b = jnp.tensordot(f, b_stack, axes=([0], [0]))
        ok &= bool(jnp.allclose(weights[f"w_{name}"], ref_w, atol=1e-5))
        ok &= bool(jnp.allclose(biases[f"b_{name}"], ref_b, atol=1e-5))
        assert weights[f"w_{name}"].shape == w_stack.shape[1:]
        assert biases[f"b_{name}"].shape == b_stack.shape[1:]

    if ok:
        print("KERNEL_OK")
    else:
        raise SystemExit("mismatch vs reference")
</pallas_src>

<mosaic_0001>
module attributes {stable_mosaic.version = 11 : i64} {
  func.func @_fused_weighted_sum_kernel(%arg0: memref<3xf32, #tpu.memory_space<smem>>, %arg1: memref<3x8x1792xf32, #tpu.memory_space<vmem>>, %arg2: memref<8x1792xf32, #tpu.memory_space<vmem>>) attributes {dimension_semantics = [], scalar_prefetch = 0 : i64, scratch_operands = 0 : i64, tpu.core_type = #tpu.core_type<tc>} {
    %c0 = arith.constant 0 : index
    %0 = memref.load %arg0[%c0] : memref<3xf32, #tpu.memory_space<smem>>
    %c0_0 = arith.constant 0 : index
    %c0_1 = arith.constant 0 : index
    %c0_2 = arith.constant 0 : index
    %1 = vector.load %arg1[%c0_0, %c0_1, %c0_2] : memref<3x8x1792xf32, #tpu.memory_space<vmem>>, vector<1x8x1792xf32>
    %2 = vector.shape_cast %1 : vector<1x8x1792xf32> to vector<8x1792xf32>
    %3 = vector.broadcast %0 : f32 to vector<8x1792xf32>
    %4 = arith.mulf %3, %2 : vector<8x1792xf32>
    %c1 = arith.constant 1 : index
    %5 = memref.load %arg0[%c1] : memref<3xf32, #tpu.memory_space<smem>>
    %c1_3 = arith.constant 1 : index
    %c0_4 = arith.constant 0 : index
    %c0_5 = arith.constant 0 : index
    %6 = vector.load %arg1[%c1_3, %c0_4, %c0_5] : memref<3x8x1792xf32, #tpu.memory_space<vmem>>, vector<1x8x1792xf32>
    %7 = vector.shape_cast %6 : vector<1x8x1792xf32> to vector<8x1792xf32>
    %8 = vector.broadcast %5 : f32 to vector<8x1792xf32>
    %9 = arith.mulf %8, %7 : vector<8x1792xf32>
    %10 = arith.addf %4, %9 : vector<8x1792xf32>
    %c2 = arith.constant 2 : index
    %11 = memref.load %arg0[%c2] : memref<3xf32, #tpu.memory_space<smem>>
    %c2_6 = arith.constant 2 : index
    %c0_7 = arith.constant 0 : index
    %c0_8 = arith.constant 0 : index
    %12 = vector.load %arg1[%c2_6, %c0_7, %c0_8] : memref<3x8x1792xf32, #tpu.memory_space<vmem>>, vector<1x8x1792xf32>
    %13 = vector.shape_cast %12 : vector<1x8x1792xf32> to vector<8x1792xf32>
    %14 = vector.broadcast %11 : f32 to vector<8x1792xf32>
    %15 = arith.mulf %14, %13 : vector<8x1792xf32>
    %16 = arith.addf %10, %15 : vector<8x1792xf32>
    %c0_9 = arith.constant 0 : index
    %c0_10 = arith.constant 0 : index
    %17 = vector.load %arg2[%c0_9, %c0_10] : memref<8x1792xf32, #tpu.memory_space<vmem>>, vector<8x1792xf32>
    tpu.vector_store %arg2[%c0_9, %c0_10], %16 {strides = array<i32>} : memref<8x1792xf32, #tpu.memory_space<vmem>>, vector<8x1792xf32>,
    return
  }
}

</mosaic_0001>

<bundles_post_ra>
// kernel: _lambda_.1
= control target key start
LH: loop header
LB: loop body
LE: loop exit
PB: predicated region body
PF: predicated region fallthrough
CT: control target
= control target key end

     0   :  { %7 = vsyncpa [#allocation4], 0  ;;  %s329_s0 = inlined_call_operand.hbm [shape: f32[3], index: 0, kind: input, shape index: {}]   ;;  %s330_s1 = inlined_call_operand.hbm [shape: f32[3,8,1792], index: 1, kind: input, shape index: {}]   ;;  %s331_s2 = inlined_call_operand.vmem [shape: f32[8,1792], index: 2, kind: output, shape index: {}]  }
   0x1   :  { %8 = vsyncpa [#allocation3], 0  ;;  %s214_s9 = smov [#allocation2]   ;;  %s215_s12 = smov [#allocation5]  }
   0x2   :  { %16 = dma.hbm_to_smem %s329_s0, 16, %s214_s9, [#allocation4]  }
   0x3   :  { %s22_s13 = sshll.u32 %s215_s12, 4  ;;  %s23_s13 = int_to_ptr.vmem [resolvable:$true] %s22_s13 }
   0x4   :  { %s198_s14 = scalar_lea.vmem %s23_s13, 5376  ;;  %p203_p1 = scmp.lt.s32.totalorder %s23_s13, %s23_s13 }
   0x5   :  { %p199_p0 = scmp.ne.s32.totalorder %s23_s13, %s198_s14  ;;  %p204_p2 = scmp.lt.s32.totalorder %s198_s14, %s198_s14 }
   0x7   :  { %p205_p3 = por %p204_p2, %p203_p1 }
   0x9   :  { %p206_p4 = pnand %p205_p3, %p199_p0 }
   0xb   :  { %209 = shalt.err (!%p206_p4)
}
   0xc   :  { %s216_s15 = smov 1792   ;;  %s217_s16 = smov 112  }
   0xd   :  { %28 = dma.hbm_to_vmem [thread:$0]  %s330_s1, 5376, %s23_s13, [#allocation3], %s216_s15, %s216_s15, %s217_s16  }
   0xe   :  { %210 = dma.done.wait [#allocation4], 16  }
   0xf   :  { %211 = vsyncadd [#allocation4], 4294967280 }
  0x10   :  { %212 = dma.done.wait [#allocation3], 5376  }
  0x11   :  { %213 = vsyncadd [#allocation3], 4294961920 }
  0x12   :  { %35 = sfence }
  0x13   :  { %s36_s0 = sld [smem:[#allocation2]]  ;;  %v37_v0 = vld [vmem:[#allocation5] sm:$0xff]  ;;  %v68_v1 = vld [vmem:[#allocation5 + $0x70] sm:$0xff]  ;;  %v38_v2 = vld [vmem:[#allocation5 + $0x8] sm:$0xff] }
  0x14   :  { %s176_s19 = sld [smem:[#allocation2 + $0x1]]  ;;  %v39_v3 = vld [vmem:[#allocation5 + $0x10] sm:$0xff]  ;;  %v113_v4 = vld [vmem:[#allocation5 + $0xe0] sm:$0xff]  ;;  %v69_v5 = vld [vmem:[#allocation5 + $0x78] sm:$0xff] }
  0x15   :  { %s177_s20 = sld [smem:[#allocation2 + $0x2]]  ;;  %v70_v6 = vld [vmem:[#allocation5 + $0x80] sm:$0xff]  ;;  %v114_v8 = vld [vmem:[#allocation5 + $0xe8] sm:$0xff]  ;;  %v115_v9 = vld [vmem:[#allocation5 + $0xf0] sm:$0xff] }
  0x16   :  { %v40_v10 = vld [vmem:[#allocation5 + $0x18] sm:$0xff]  ;;  %v71_v15 = vld [vmem:[#allocation5 + $0x88] sm:$0xff]  ;;  %v41_v21 = vld [vmem:[#allocation5 + $0x20] sm:$0xff] }
  0x17   :  { %v116_v16 = vld [vmem:[#allocation5 + $0xf8] sm:$0xff]  ;;  %v72_v22 = vld [vmem:[#allocation5 + $0x90] sm:$0xff]  ;;  %v117_v23 = vld [vmem:[#allocation5 + $0x100] sm:$0xff] }
  0x18   :  { %v42_v32 = vld [vmem:[#allocation5 + $0x28] sm:$0xff]  ;;  %v73_v33 = vld [vmem:[#allocation5 + $0x98] sm:$0xff]  ;;  %v43_v39 = vld [vmem:[#allocation5 + $0x30] sm:$0xff] }
  0x19   :  { %v239_v7 = vstv %s36_s0  ;;  %v118_v34 = vld [vmem:[#allocation5 + $0x108] sm:$0xff]  ;;  %v74_v40 = vld [vmem:[#allocation5 + $0xa0] sm:$0xff]  ;;  %v119_v41 = vld [vmem:[#allocation5 + $0x110] sm:$0xff] }
  0x1a   :  { %v52_v11 = vmul.f32 %v239_v7, %v37_v0  ;;  %v242_v12 = vstv %s176_s19  ;;  %v53_v13 = vmul.f32 %v239_v7, %v38_v2  ;;  %v54_v14 = vmul.f32 %v239_v7, %v39_v3  ;;  %v44_v46 = vld [vmem:[#allocation5 + $0x38] sm:$0xff]  ;;  %v75_v47 = vld [vmem:[#allocation5 + $0xa8] sm:$0xff]  ;;  %v45_v53 = vld [vmem:[#allocation5 + $0x40] sm:$0xff] }
  0x1b   :  { %v83_v17 = vmul.f32 %v242_v12, %v68_v1  ;;  %v247_v18 = vstv %s177_s20  ;;  %v84_v19 = vmul.f32 %v242_v12, %v69_v5  ;;  %v85_v20 = vmul.f32 %v242_v12, %v70_v6  ;;  %v120_v52 = vld [vmem:[#allocation5 + $0x118] sm:$0xff]  ;;  %v76_v54 = vld [vmem:[#allocation5 + $0xb0] sm:$0xff]  ;;  %v121_v59 = vld [vmem:[#allocation5 + $0x120] sm:$0xff] }
  0x1c   :  { %v128_v24 = vmul.f32 %v247_v18, %v113_v4  ;;  %v129_v25 = vmul.f32 %v247_v18, %v114_v8  ;;  %v130_v26 = vmul.f32 %v247_v18, %v115_v9  ;;  %v55_v27 = vmul.f32 %v239_v7, %v40_v10  ;;  %v46_v60 = vld [vmem:[#allocation5 + $0x48] sm:$0xff]  ;;  %v77_v1 = vld [vmem:[#allocation5 + $0xb8] sm:$0xff]  ;;  %v47_v8 = vld [vmem:[#allocation5 + $0x50] sm:$0xff] }
  0x1d   :  { %v97_v28 = vadd.f32 %v83_v17, %v52_v11  ;;  %v98_v29 = vadd.f32 %v84_v19, %v53_v13  ;;  %v99_v30 = vadd.f32 %v85_v20, %v54_v14  ;;  %v86_v31 = vmul.f32 %v242_v12, %v71_v15  ;;  %v122_v2 = vld [vmem:[#allocation5 + $0x128] sm:$0xff]  ;;  %v78_v9 = vld [vmem:[#allocation5 + $0xc0] sm:$0xff]  ;;  %v123_v10 = vld [vmem:[#allocation5 + $0x130] sm:$0xff] }
  0x1e   :  { %v131_v35 = vmul.f32 %v247_v18, %v116_v16  ;;  %v56_v36 = vmul.f32 %v239_v7, %v41_v21  ;;  %v87_v37 = vmul.f32 %v242_v12, %v72_v22  ;;  %v132_v38 = vmul.f32 %v247_v18, %v117_v23  ;;  %v48_v16 = vld [vmem:[#allocation5 + $0x58] sm:$0xff]  ;;  %v79_v17 = vld [vmem:[#allocation5 + $0xc8] sm:$0xff] }
  0x1f   :  { %v142_v42 = vadd.f32 %v128_v24, %v97_v28  ;;  %v143_v43 = vadd.f32 %v129_v25, %v98_v29  ;;  %v144_v44 = vadd.f32 %v130_v26, %v99_v30  ;;  %v100_v45 = vadd.f32 %v86_v31, %v55_v27  ;;  %v124_v23 = vld [vmem:[#allocation5 + $0x138] sm:$0xff]  ;;  %v49_v24 = vld [vmem:[#allocation5 + $0x60] sm:$0xff]  ;;  %v80_v25 = vld [vmem:[#allocation5 + $0xd0] sm:$0xff] }
  0x20   :  { %v101_v48 = vadd.f32 %v87_v37, %v56_v36  ;;  %v57_v49 = vmul.f32 %v239_v7, %v42_v32  ;;  %v88_v50 = vmul.f32 %v242_v12, %v73_v33  ;;  %v133_v51 = vmul.f32 %v247_v18, %v118_v34  ;;  %v125_v30 = vld [vmem:[#allocation5 + $0x140] sm:$0xff]  ;;  %v50_v31 = vld [vmem:[#allocation5 + $0x68] sm:$0xff]  ;;  %v81_v36 = vld [vmem:[#allocation5 + $0xd8] sm:$0xff] }
  0x21   :  { %156 = vst [vmem:[%s331_s2] sm:$0xff] %v142_v42  ;;  %157 = vst [vmem:[%s331_s2 + $0x8] sm:$0xff] %v143_v43  ;;  %v145_v55 = vadd.f32 %v131_v35, %v100_v45  ;;  %v58_v56 = vmul.f32 %v239_v7, %v43_v39  ;;  %v89_v57 = vmul.f32 %v242_v12, %v74_v40  ;;  %v126_v37 = vld [vmem:[#allocation5 + $0x148] sm:$0xff] }
  0x22   :  { %158 = vst [vmem:[%s331_s2 + $0x10] sm:$0xff] %v144_v44  ;;  %v134_v58 = vmul.f32 %v247_v18, %v119_v41  ;;  %v146_v61 = vadd.f32 %v132_v38, %v101_v48  ;;  %v102_v62 = vadd.f32 %v88_v50, %v57_v49  ;;  %v59_v63 = vmul.f32 %v239_v7, %v44_v46 }
  0x23   :  { %v90_v0 = vmul.f32 %v242_v12, %v75_v47  ;;  %159 = vst [vmem:[%s331_s2 + $0x18] sm:$0xff] %v145_v55  ;;  %v103_v3 = vadd.f32 %v89_v57, %v58_v56  ;;  %v135_v4 = vmul.f32 %v247_v18, %v120_v52  ;;  %v60_v5 = vmul.f32 %v239_v7, %v45_v53 }
  0x24   :  { %v91_v6 = vmul.f32 %v242_v12, %v76_v54  ;;  %160 = vst [vmem:[%s331_s2 + $0x20] sm:$0xff] %v146_v61  ;;  %v147_v11 = vadd.f32 %v133_v51, %v102_v62  ;;  %v136_v14 = vmul.f32 %v247_v18, %v121_v59  ;;  %v61_v15 = vmul.f32 %v239_v7, %v46_v60 }
  0x25   :  { %v104_v13 = vadd.f32 %v90_v0, %v59_v63  ;;  %v148_v19 = vadd.f32 %v134_v58, %v103_v3  ;;  %v92_v21 = vmul.f32 %v242_v12, %v77_v1  ;;  %v137_v22 = vmul.f32 %v247_v18, %v122_v2 }
  0x26   :  { %v105_v20 = vadd.f32 %v91_v6, %v60_v5  ;;  %161 = vst [vmem:[%s331_s2 + $0x28] sm:$0xff] %v147_v11  ;;  %v62_v27 = vmul.f32 %v239_v7, %v47_v8  ;;  %v93_v28 = vmul.f32 %v242_v12, %v78_v9  ;;  %v138_v29 = vmul.f32 %v247_v18, %v123_v10 }
  0x27   :  { %v149_v26 = vadd.f32 %v135_v4, %v104_v13  ;;  %162 = vst [vmem:[%s331_s2 + $0x30] sm:$0xff] %v148_v19  ;;  %v106_v33 = vadd.f32 %v92_v21, %v61_v15  ;;  %v63_v34 = vmul.f32 %v239_v7, %v48_v16  ;;  %v94_v35 = vmul.f32 %v242_v12, %v79_v17 }
  0x28   :  { %v150_v32 = vadd.f32 %v136_v14, %v105_v20  ;;  %v107_v38 = vadd.f32 %v93_v28, %v62_v27  ;;  %v139_v39 = vmul.f32 %v247_v18, %v124_v23  ;;  %v64_v40 = vmul.f32 %v239_v7, %v49_v24 }
  0x29   :  { %163 = vst [vmem:[%s331_s2 + $0x38] sm:$0xff] %v149_v26  ;;  %v95_v41 = vmul.f32 %v242_v12, %v80_v25  ;;  %v151_v42 = vadd.f32 %v137_v22, %v106_v33  ;;  %v108_v43 = vadd.f32 %v94_v35, %v63_v34  ;;  %v140_v44 = vmul.f32 %v247_v18, %v125_v30 }
  0x2a   :  { %164 = vst [vmem:[%s331_s2 + $0x40] sm:$0xff] %v150_v32  ;;  %v65_v45 = vmul.f32 %v239_v7, %v50_v31  ;;  %v152_v46 = vadd.f32 %v138_v29, %v107_v38  ;;  %v96_v48 = vmul.f32 %v242_v12, %v81_v36  ;;  %v141_v49 = vmul.f32 %v247_v18, %v126_v37 }
  0x2b   :  { %v109_v47 = vadd.f32 %v95_v41, %v64_v40  ;;  %165 = vst [vmem:[%s331_s2 + $0x48] sm:$0xff] %v151_v42  ;;  %v153_v50 = vadd.f32 %v139_v39, %v108_v43 }
  0x2c   :  { %166 = vst [vmem:[%s331_s2 + $0x50] sm:$0xff] %v152_v46  ;;  %v110_v52 = vadd.f32 %v96_v48, %v65_v45 }
  0x2d   :  { %v154_v51 = vadd.f32 %v140_v44, %v109_v47  ;;  %167 = vst [vmem:[%s331_s2 + $0x58] sm:$0xff] %v153_v50 }
  0x2e   :  { %v155_v7 = vadd.f32 %v141_v49, %v110_v52 }
  0x2f   :  { %168 = vst [vmem:[%s331_s2 + $0x60] sm:$0xff] %v154_v51 }
  0x30   :  { %169 = vst [vmem:[%s331_s2 + $0x68] sm:$0xff] %v155_v7 }
  0x31   :  { %174 = vsyncpa [#allocation3], 1 }
  0x32   :  { %175 = vsyncpa [#allocation4], 1 }

</bundles_post_ra>
